<compile_context>
chip_gen: v5e
topology: v5e:2x2
jax: 0.10.0
libtpu: 0.0.40
codegen_flags: <defaults>
</compile_context>

<pallas_src>
import jax
import jax.numpy as jnp
from jax.experimental import pallas as pl
from jax.experimental.pallas import tpu as pltpu


def affine_kernel(x_ref, w_ref, b_ref, o_ref):
    # x_ref: [tb, D]  w_ref: [1, D]  b_ref: [1, 1]  o_ref: [tb, 1]
    # VPU broadcast-multiply across lanes, then an XLU reduce over the lane
    # axis — no MXU push/pop latency for these tiny (K<=32, N=1) shapes.
    prod = x_ref[...] * w_ref[...]                              # [tb, D]
    o_ref[...] = (jnp.sum(prod, axis=-1, keepdims=True)         # [tb, 1]
                  + b_ref[...]).astype(o_ref.dtype)


def _fold_affine(params):
    """Fold the 5 activation-free Linear layers into one affine map (exact up
    to f32 rounding order)."""
    w1, b1 = params["w1"], params["b1"]
    w2, b2 = params["w2"], params["b2"]
    w3, b3 = params["w3"], params["b3"]
    w4, b4 = params["w4"], params["b4"]
    wo, bo = params["wo"], params["bo"]
    w_eff = w1 @ w2 @ w3 @ w4 @ wo                                     # [D, 1]
    b_eff = (((b1 @ w2 + b2) @ w3 + b3) @ w4 + b4) @ wo + bo           # [1, 1]
    return w_eff, b_eff


def baseball_forward(x, params, *, tb=None):
    """x: [B, D] float32. params: weights stored [in, out], biases [1, out]
    (so x @ W + b matches PyTorch's x @ W.T + b convention)."""
    B, D = x.shape
    w_eff, b_eff = _fold_affine(params)          # tiny, done once in the wrapper
    w_row = w_eff.reshape(1, D)                  # lane-dense row for the kernel

    # Grid sizing: per grid step costs ~0.35us of pipeline overhead while the
    # per-step compute here is a handful of VPU/XLU ops, so keep steps few.
    # One step for small batches; ~1024-row tiles for big batches (>= 2
    # parallel steps -> both v7x TensorCores get work).
    if tb is None:
        tb = B if B <= 1024 else 1024
    tb = max(8, ((tb + 7) // 8) * 8)             # sublane-aligned tile
    n_tiles = pl.cdiv(B, tb)
    bp = n_tiles * tb
    if bp != B:                                  # pad ragged batch, slice after
        x = jnp.pad(x, ((0, bp - B), (0, 0)))

    out = pl.pallas_call(
        affine_kernel,
        out_shape=jax.ShapeDtypeStruct((bp, 1), jnp.float32),
        grid_spec=pltpu.PrefetchScalarGridSpec(
            num_scalar_prefetch=0,
            grid=(n_tiles,),
            in_specs=[
                pl.BlockSpec((tb, D), lambda i: (i, 0)),   # x batch tile
                pl.BlockSpec((1, D), lambda i: (0, 0)),    # folded weight row
                pl.BlockSpec((1, 1), lambda i: (0, 0)),    # folded bias
            ],
            out_specs=pl.BlockSpec((tb, 1), lambda i: (i, 0)),
        ),
        compiler_params=pltpu.CompilerParams(
            dimension_semantics=("parallel",)),
    )(x, w_row, b_eff)
    return out[:B]


def init_params(key, input_dim):
    """Deterministic init mimicking torch.nn.Linear (uniform +/- 1/sqrt(fan_in)).
    Weights stored as [in, out]; biases as [1, out]."""
    dims = [
        ("w1", "b1", input_dim, 2 * input_dim),
        ("w2", "b2", 2 * input_dim, 4 * input_dim),
        ("w3", "b3", 4 * input_dim, 2 * input_dim),
        ("w4", "b4", 2 * input_dim, input_dim),
        ("wo", "bo", input_dim, 1),
    ]
    params = {}
    for wname, bname, fan_in, fan_out in dims:
        key, kw, kb = jax.random.split(key, 3)
        bound = 1.0 / (fan_in ** 0.5)
        params[wname] = jax.random.uniform(
            kw, (fan_in, fan_out), jnp.float32, -bound, bound)
        params[bname] = jax.random.uniform(
            kb, (1, fan_out), jnp.float32, -bound, bound)
    return params


def reference_forward(x, params):
    # Unfused 5-layer chain, mirrors the PyTorch module op-for-op.
    h = x @ params["w1"] + params["b1"]
    h = h @ params["w2"] + params["b2"]
    h = h @ params["w3"] + params["b3"]
    h = h @ params["w4"] + params["b4"]
    return h @ params["wo"] + params["bo"]


if __name__ == "__main__":
    key = jax.random.PRNGKey(0)
    input_dim = 8          # == len(args.input_args) - 1
    batch = 64

    kx, kp = jax.random.split(key)
    x = jax.random.normal(kx, (batch, input_dim), jnp.float32)
    params = init_params(kp, input_dim)

    out = baseball_forward(x, params)
    out = jax.block_until_ready(out)

    ref = reference_forward(x, params)
    assert out.shape == (batch, 1)
    # Folded affine differs from the layer-by-layer chain only in f32
    # rounding order; tolerance kept tight.
    assert jnp.allclose(out, ref, atol=1e-4, rtol=1e-4), "mismatch vs JAX reference"

    print("KERNEL_OK")
</pallas_src>

<mosaic_0001>
module attributes {stable_mosaic.version = 11 : i64} {
  func.func @affine_kernel(%arg0: i32, %arg1: memref<64x8xf32, #tpu.memory_space<vmem>>, %arg2: memref<1x8xf32, #tpu.memory_space<vmem>>, %arg3: memref<1x1xf32, #tpu.memory_space<vmem>>, %arg4: memref<64x1xf32, #tpu.memory_space<vmem>>) attributes {dimension_semantics = [#tpu.dimension_semantics<parallel>], iteration_bounds = array<i64: 1>, scalar_prefetch = 0 : i64, scratch_operands = 0 : i64, tpu.core_type = #tpu.core_type<tc>, window_params = [{transform_indices = @transform_0, window_bounds = array<i64: 64, 8>}, {pipeline_mode = #tpu.pipeline_mode<synchronous>, transform_indices = @transform_1, window_bounds = array<i64: 1, 8>}, {pipeline_mode = #tpu.pipeline_mode<synchronous>, transform_indices = @transform_2, window_bounds = array<i64: 1, 1>}, {transform_indices = @transform_3, window_bounds = array<i64: 64, 1>}]} {
    %c0 = arith.constant 0 : index
    %c0_0 = arith.constant 0 : index
    %0 = vector.load %arg1[%c0, %c0_0] : memref<64x8xf32, #tpu.memory_space<vmem>>, vector<64x8xf32>
    %c0_1 = arith.constant 0 : index
    %c0_2 = arith.constant 0 : index
    %1 = vector.load %arg2[%c0_1, %c0_2] : memref<1x8xf32, #tpu.memory_space<vmem>>, vector<1x8xf32>
    %2 = vector.broadcast %1 : vector<1x8xf32> to vector<64x8xf32>
    %3 = arith.mulf %0, %2 : vector<64x8xf32>
    %cst = arith.constant dense<0.000000e+00> : vector<64xf32>
    %4 = vector.multi_reduction <add>, %3, %cst [1] : vector<64x8xf32> to vector<64xf32>
    %5 = vector.shape_cast %4 : vector<64xf32> to vector<64x1xf32>
    %c0_3 = arith.constant 0 : index
    %c0_4 = arith.constant 0 : index
    %6 = vector.load %arg3[%c0_3, %c0_4] : memref<1x1xf32, #tpu.memory_space<vmem>>, vector<1x1xf32>
    %7 = vector.broadcast %6 : vector<1x1xf32> to vector<64x1xf32>
    %8 = arith.addf %5, %7 : vector<64x1xf32>
    %c0_5 = arith.constant 0 : index
    %c0_6 = arith.constant 0 : index
    %9 = vector.load %arg4[%c0_5, %c0_6] : memref<64x1xf32, #tpu.memory_space<vmem>>, vector<64x1xf32>
    tpu.vector_store %arg4[%c0_5, %c0_6], %8 {strides = array<i32>} : memref<64x1xf32, #tpu.memory_space<vmem>>, vector<64x1xf32>,
    return
  }
  func.func @transform_0(%arg0: i32) -> (i32, i32) {
    %c0_i32 = arith.constant 0 : i32
    %c0_i32_0 = arith.constant 0 : i32
    return %arg0, %c0_i32 : i32, i32
  }
  func.func @transform_1(%arg0: i32) -> (i32, i32) {
    %c0_i32 = arith.constant 0 : i32
    %c0_i32_0 = arith.constant 0 : i32
    %c0_i32_1 = arith.constant 0 : i32
    return %c0_i32, %c0_i32_0 : i32, i32
  }
  func.func @transform_2(%arg0: i32) -> (i32, i32) {
    %c0_i32 = arith.constant 0 : i32
    %c0_i32_0 = arith.constant 0 : i32
    %c0_i32_1 = arith.constant 0 : i32
    return %c0_i32, %c0_i32_0 : i32, i32
  }
  func.func @transform_3(%arg0: i32) -> (i32, i32) {
    %c0_i32 = arith.constant 0 : i32
    %c0_i32_0 = arith.constant 0 : i32
    return %arg0, %c0_i32 : i32, i32
  }
}

</mosaic_0001>

<bundles_post_ra>
// kernel: tpu_custom_call.1
= control target key start
LH: loop header
LB: loop body
LE: loop exit
PB: predicated region body
PF: predicated region fallthrough
CT: control target
= control target key end

     0   :  { %vm36_vm0 = vcmask 64512   ;;  %vm73_vm1 = vcmask 7168   ;;  %s178_s0 = inlined_call_operand.vmem [shape: f32[64,8], index: 0, kind: input, shape index: {}]   ;;  %s179_s1 = inlined_call_operand.vmem [shape: f32[1,8], index: 1, kind: input, shape index: {}]   ;;  %s180_s2 = inlined_call_operand.<no memory space> [shape: f32[1,1], index: 2, kind: input, shape index: {}]   ;;  %s181_s3 = inlined_call_operand.vmem [shape: f32[64,1], index: 3, kind: output, shape index: {}]  }
   0x1   :  { %v18_v0 = vld [vmem:[%s178_s0 + $0x10] sm:$0xff]  ;;  %v86_v1 = vld [vmem:[%s179_s1] ss:$0 sm:$0xff]  ;;  %v8_v2 = vstv %s180_s2  ;;  %v19_v8 = vld [vmem:[%s178_s0 + $0x18] sm:$0xff] }
   0x2   :  { %v16_v3 = vld [vmem:[%s178_s0] sm:$0xff]  ;;  %9 = vst [vmem:[#allocation2] sm:$0x1] %v8_v2  ;;  %v30_v5 = vmul.f32 %v86_v1, %v18_v0  ;;  %v17_v9 = vld [vmem:[%s178_s0 + $0x8] sm:$0xff]  ;;  %v31_v14 = vmul.f32 %v86_v1, %v19_v8  ;;  %v23_v20 = vld [vmem:[%s178_s0 + $0x38] sm:$0xff] }
   0x3   :  { %v20_v4 = vld [vmem:[%s178_s0 + $0x20] sm:$0xff]  ;;  %v28_v6 = vmul.f32 %v86_v1, %v16_v3  ;;  %v21_v13 = vld [vmem:[%s178_s0 + $0x28] sm:$0xff]  ;;  %v29_v15 = vmul.f32 %v86_v1, %v17_v9  ;;  %v22_v21 = vld [vmem:[%s178_s0 + $0x30] sm:$0xff]  ;;  %v35_v22 = vmul.f32 %v86_v1, %v23_v20 }
   0x4   :  { %v32_v7 = vmul.f32 %v86_v1, %v20_v4  ;;  %v43_v10 = vsel %vm36_vm0, %v30_v5, 0.0  ;;  %v33_v16 = vmul.f32 %v86_v1, %v21_v13  ;;  %v46_v17 = vsel %vm36_vm0, %v31_v14, 0.0 }
   0x5   :  { %v37_v11 = vsel %vm36_vm0, %v28_v6, 0.0  ;;  %44 = vadd.xlane.f32.xlu1 %v43_v10  ;;  %v40_v18 = vsel %vm36_vm0, %v29_v15, 0.0  ;;  %v34_v23 = vmul.f32 %v86_v1, %v22_v21  ;;  %v58_v24 = vsel %vm36_vm0, %v35_v22, 0.0 }
   0x6   :  { %v49_v12 = vsel %vm36_vm0, %v32_v7, 0.0  ;;  %38 = vadd.xlane.f32.xlu0 %v37_v11  ;;  %v52_v19 = vsel %vm36_vm0, %v33_v16, 0.0 }
   0x7   :  { %50 = vadd.xlane.f32.xlu2 %v49_v12  ;;  %v55_v25 = vsel %vm36_vm0, %v34_v23, 0.0 }
   0x9   :  { %v87_v26 = vld [vmem:[#allocation2] ss:$0 sm:$0xff] }
   0xd   :  { %47 = vadd.xlane.f32.xlu1 %v46_v17 }
   0xe   :  { %41 = vadd.xlane.f32.xlu0 %v40_v18 }
   0xf   :  { %53 = vadd.xlane.f32.xlu2 %v52_v19 }
  0x15   :  { %59 = vadd.xlane.f32.xlu1 %v58_v24 }
  0x16   :  { %56 = vadd.xlane.f32.xlu0 %v55_v25 }
  0x78   :  { %v45_v27 = vpop.xlane.xlu1 %44 }
  0x79   :  { %v39_v28 = vpop.xlane.xlu0 %38  ;;  %v67_v29 = vadd.f32 %v87_v26, %v45_v27 }
  0x7a   :  { %v65_v30 = vadd.f32 %v87_v26, %v39_v28  ;;  %v51_v31 = vpop.xlane.xlu2 %50 }
  0x7b   :  { %v69_v32 = vadd.f32 %v87_v26, %v51_v31  ;;  %76 = vst.msk [vmem:[%s181_s3 + $0x10] sm:$0xff] %vm73_vm1, %v67_v29 }
  0x7c   :  { %74 = vst.msk [vmem:[%s181_s3] sm:$0xff] %vm73_vm1, %v65_v30 }
  0x7d   :  { %78 = vst.msk [vmem:[%s181_s3 + $0x20] sm:$0xff] %vm73_vm1, %v69_v32 }
  0x80   :  { %v48_v33 = vpop.xlane.xlu1 %47 }
  0x81   :  { %v42_v34 = vpop.xlane.xlu0 %41  ;;  %v68_v35 = vadd.f32 %v87_v26, %v48_v33 }
  0x82   :  { %v66_v36 = vadd.f32 %v87_v26, %v42_v34  ;;  %v54_v37 = vpop.xlane.xlu2 %53 }
  0x83   :  { %v70_v38 = vadd.f32 %v87_v26, %v54_v37  ;;  %77 = vst.msk [vmem:[%s181_s3 + $0x18] sm:$0xff] %vm73_vm1, %v68_v35 }
  0x84   :  { %75 = vst.msk [vmem:[%s181_s3 + $0x8] sm:$0xff] %vm73_vm1, %v66_v36 }
  0x85   :  { %79 = vst.msk [vmem:[%s181_s3 + $0x28] sm:$0xff] %vm73_vm1, %v70_v38 }
  0x88   :  { %v60_v39 = vpop.xlane.xlu1 %59 }
  0x89   :  { %v57_v40 = vpop.xlane.xlu0 %56  ;;  %v72_v41 = vadd.f32 %v87_v26, %v60_v39 }
  0x8a   :  { %v71_v42 = vadd.f32 %v87_v26, %v57_v40 }
  0x8b   :  { %81 = vst.msk [vmem:[%s181_s3 + $0x38] sm:$0xff] %vm73_vm1, %v72_v41 }
  0x8c   :  { %80 = vst.msk [vmem:[%s181_s3 + $0x30] sm:$0xff] %vm73_vm1, %v71_v42 }

</bundles_post_ra>
